<compile_context>
chip_gen: v6e
topology: v6e:2x2x1
jax: 0.10.0
libtpu: 0.0.40
codegen_flags: <defaults>
</compile_context>

<pallas_src>
import math
import jax
import jax.numpy as jnp
from jax import lax
from jax.experimental import pallas as pl
from jax.experimental.pallas import tpu as pltpu


def _mcl_kernel(x_ref, w_ref, b_ref, o_ref):
    # x_ref: (bt, K)   streamed activations (double-buffered), K = C*F
    # w_ref: (C, K)    block-diagonal weights (VMEM-resident, dtype == x.dtype)
    # b_ref: (C, 1)    bias (VMEM-resident, f32)
    # o_ref: (C, bt)   transposed output tile (lane-dense over the batch tile)
    #
    # NT dimension numbers: contract the last dim of both operands, i.e.
    # w @ x.T, WITHOUT materializing a transpose of the big x operand.
    s = lax.dot_general(
        w_ref[...], x_ref[...],
        dimension_numbers=(((1,), (1,)), ((), ())),
        preferred_element_type=jnp.float32,
    )                                          # (C, bt) f32, MXU
    o_ref[...] = s + b_ref[...]                # bias broadcasts over the batch lanes


def _round_up(v, m):
    return ((v + m - 1) // m) * m


def _choose_batch_tile(batch, n_channels, k, x_itemsize,
                       target_tile_bytes, vmem_budget_bytes):
    """Pick the batch tile bt budgeting the full VMEM picture:
       2x input buffers + 2x output buffers (+ tiny resident weights/bias)."""
    k_pad = _round_up(k, 128)                              # lane padding of the x buffer
    in_bytes_per_row = k_pad * x_itemsize                  # one batch row of an x buffer
    out_bytes_per_col = _round_up(max(n_channels, 1), 8) * 4  # one batch col of a (C, bt) f32 out buffer
    per_b = 2 * in_bytes_per_row + 2 * out_bytes_per_col   # double-buffered in + out
    bt = min(max(1, vmem_budget_bytes // per_b),
             max(1, target_tile_bytes // in_bytes_per_row))
    if bt >= batch:
        return batch                                       # full dim -> always legal
    # Multiple of 128 so the (C, bt) output block stays lane-dense (unmasked vst)
    # and the (bt, K) input block satisfies the (8, 128) rule.
    bt = max(128, (bt // 128) * 128)
    return min(bt, batch)


def multi_channel_linear(x, weights, bias=None, *,
                         target_tile_bytes=8 * 1024 * 1024,
                         vmem_budget_bytes=36 * 1024 * 1024):
    """x: (B, C, F), weights: (C, F), bias: (C,) or None -> (B, C, 1) float32."""
    B, C, F = x.shape
    assert weights.shape == (C, F)
    if bias is None:
        bias = jnp.zeros((C,), dtype=jnp.float32)
    assert bias.shape == (C,)
    K = C * F

    # Lane-dense layout: contiguous reshape, free in HBM.
    x2 = x.reshape(B, K)

    # Block-diagonal transposed weights: w_bd[c, c*F + f] = weights[c, f], else 0.
    # Cast to x.dtype so the MXU sees matching operand dtypes (bf16 stays bf16).
    eye = jnp.eye(C, dtype=weights.dtype)
    w_bd = (eye[:, :, None] * weights[None, :, :]).reshape(C, K).astype(x.dtype)
    b2 = bias.reshape(C, 1).astype(jnp.float32)

    bt = _choose_batch_tile(B, C, K, jnp.dtype(x.dtype).itemsize,
                            target_tile_bytes, vmem_budget_bytes)
    grid = (pl.cdiv(B, bt),)

    out = pl.pallas_call(
        _mcl_kernel,
        out_shape=jax.ShapeDtypeStruct((C, B), jnp.float32),   # transposed output
        grid=grid,
        in_specs=[
            pl.BlockSpec((bt, K), lambda i: (i, 0)),   # streamed x tiles
            pl.BlockSpec((C, K), lambda i: (0, 0)),    # weights: constant block -> resident
            pl.BlockSpec((C, 1), lambda i: (0, 0)),    # bias: constant block -> resident
        ],
        out_specs=pl.BlockSpec((C, bt), lambda i: (0, i)),     # lane-dense over batch
        compiler_params=pltpu.CompilerParams(
            dimension_semantics=("parallel",),         # v7x: shard batch over 2 TCs
            vmem_limit_bytes=48 * 1024 * 1024,
        ),
    )(x2, w_bd, b2)

    # Tiny (C, B) -> (B, C, 1) fixup in the wrapper (output is 1/F of input traffic).
    return out.T.reshape(B, C, 1)


def init_params(key, n_channels, in_features):
    """Deterministic init matching the PyTorch module's init scheme."""
    kw, kb = jax.random.split(key)
    # kaiming_uniform_ with a=sqrt(5) -> bound = 1 / sqrt(fan_in)
    fan_in = in_features
    bound = 1.0 / math.sqrt(fan_in)
    weights = jax.random.uniform(
        kw, (n_channels, in_features), jnp.float32, -bound, bound
    )
    bias = jax.random.uniform(kb, (n_channels,), jnp.float32, -bound, bound)
    return weights, bias


if __name__ == "__main__":
    B, C, F = 2, 4, 32  # batch, n_channels, in_features

    key = jax.random.PRNGKey(0)
    kx, kp = jax.random.split(key)
    x = jax.random.normal(kx, (B, C, F), dtype=jnp.float32)
    weights, bias = init_params(kp, C, F)

    out = jax.block_until_ready(multi_channel_linear(x, weights, bias))

    # Reference in plain JAX.
    ref = (jnp.einsum("bcf,cf->bc", x, weights) + bias[None, :]).reshape(B, C, 1)

    assert out.shape == (B, C, 1), out.shape
    assert jnp.allclose(out, ref, atol=1e-5, rtol=1e-5), (
        float(jnp.max(jnp.abs(out - ref)))
    )

    print("KERNEL_OK")
</pallas_src>

<mosaic_0001>
module attributes {stable_mosaic.version = 11 : i64} {
  func.func @_mcl_kernel(%arg0: i32, %arg1: memref<2x128xf32, #tpu.memory_space<vmem>>, %arg2: memref<4x128xf32, #tpu.memory_space<vmem>>, %arg3: memref<4x1xf32, #tpu.memory_space<vmem>>, %arg4: memref<4x2xf32, #tpu.memory_space<vmem>>) attributes {dimension_semantics = [#tpu.dimension_semantics<parallel>], iteration_bounds = array<i64: 1>, scalar_prefetch = 0 : i64, scratch_operands = 0 : i64, tpu.core_type = #tpu.core_type<tc>, window_params = [{transform_indices = @transform_0, window_bounds = array<i64: 2, 128>}, {pipeline_mode = #tpu.pipeline_mode<synchronous>, transform_indices = @transform_1, window_bounds = array<i64: 4, 128>}, {pipeline_mode = #tpu.pipeline_mode<synchronous>, transform_indices = @transform_2, window_bounds = array<i64: 4, 1>}, {transform_indices = @transform_3, window_bounds = array<i64: 4, 2>}]} {
    %c0 = arith.constant 0 : index
    %c0_0 = arith.constant 0 : index
    %0 = vector.load %arg2[%c0, %c0_0] : memref<4x128xf32, #tpu.memory_space<vmem>>, vector<4x128xf32>
    %c0_1 = arith.constant 0 : index
    %c0_2 = arith.constant 0 : index
    %1 = vector.load %arg1[%c0_1, %c0_2] : memref<2x128xf32, #tpu.memory_space<vmem>>, vector<2x128xf32>
    %cst = arith.constant dense<0.000000e+00> : vector<4x2xf32>
    %2 = tpu.matmul %0, %1, %cst {dimension_numbers = #tpu.dot_dimension_numbers<[1], [1], [0], [0], [0, 0, 1, 0], [], []>} : vector<4x128xf32>, vector<2x128xf32>, vector<4x2xf32> -> vector<4x2xf32>
    %c0_3 = arith.constant 0 : index
    %c0_4 = arith.constant 0 : index
    %3 = vector.load %arg3[%c0_3, %c0_4] : memref<4x1xf32, #tpu.memory_space<vmem>>, vector<4x1xf32>
    %4 = vector.broadcast %3 : vector<4x1xf32> to vector<4x2xf32>
    %5 = arith.addf %2, %4 : vector<4x2xf32>
    %c0_5 = arith.constant 0 : index
    %c0_6 = arith.constant 0 : index
    %6 = vector.load %arg4[%c0_5, %c0_6] : memref<4x2xf32, #tpu.memory_space<vmem>>, vector<4x2xf32>
    tpu.vector_store %arg4[%c0_5, %c0_6], %5 {strides = array<i32>} : memref<4x2xf32, #tpu.memory_space<vmem>>, vector<4x2xf32>,
    return
  }
  func.func @transform_0(%arg0: i32) -> (i32, i32) {
    %c0_i32 = arith.constant 0 : i32
    %c0_i32_0 = arith.constant 0 : i32
    return %arg0, %c0_i32 : i32, i32
  }
  func.func @transform_1(%arg0: i32) -> (i32, i32) {
    %c0_i32 = arith.constant 0 : i32
    %c0_i32_0 = arith.constant 0 : i32
    %c0_i32_1 = arith.constant 0 : i32
    return %c0_i32, %c0_i32_0 : i32, i32
  }
  func.func @transform_2(%arg0: i32) -> (i32, i32) {
    %c0_i32 = arith.constant 0 : i32
    %c0_i32_0 = arith.constant 0 : i32
    %c0_i32_1 = arith.constant 0 : i32
    return %c0_i32, %c0_i32_0 : i32, i32
  }
  func.func @transform_3(%arg0: i32) -> (i32, i32) {
    %c0_i32 = arith.constant 0 : i32
    %c0_i32_0 = arith.constant 0 : i32
    return %c0_i32, %arg0 : i32, i32
  }
}

</mosaic_0001>

<bundles_post_ra>
// kernel: tpu_custom_call.1
= control target key start
LH: loop header
LB: loop body
LE: loop exit
PB: predicated region body
PF: predicated region fallthrough
CT: control target
= control target key end

     0   :  { %v109_v0 = vmov 0.0   ;;  %vm110_vm0 = vmmov 0   ;;  %v111_v4 = vmov 0   ;;  %vm92_vm1 = vcmask 11264   ;;  %s144_s0 = inlined_call_operand.vmem [shape: f32[2,128], index: 0, kind: input, shape index: {}]   ;;  %s145_s1 = inlined_call_operand.vmem [shape: f32[4,128], index: 1, kind: input, shape index: {}]   ;;  %s146_s2 = inlined_call_operand.vmem [shape: f32[4,1], index: 2, kind: input, shape index: {}]   ;;  %s147_s3 = inlined_call_operand.vmem [shape: f32[4,2], index: 3, kind: output, shape index: {}]  }
   0x1   :  { %100 = vmatprep.subr.mxu0 %v109_v0  ;;  %v15_v1 = vld [vmem:[%s144_s0] sm:$0x3]  ;;  %102 = vmatprep.mubr.msk.f32.mxu0 %vm110_vm0, %v109_v0 }
   0x2   :  { %v16_v2 = vld [vmem:[%s146_s2] sm:$0xf]  ;;  %101 = vmatpush3.xpose.msra.mxu0 %v15_v1  ;;  %108 = vset.pattern.permute.xlu0 %v111_v4 }
   0x3   :  { %v14_v3 = vld [vmem:[%s145_s1] sm:$0xf]  ;;  %19 = vperm.xlu0 %108, %v16_v2  }
   0x5   :  { %103 = vmatmul.mubr.f32.vlgmr.msra.gmra.mxu0 %v14_v3 }
  0x7e   :  { %v20_v5 = vpop.permute.xlu0 %19 }
  0xc5   :  { %v88_v6 = vpop.f32.mrf.mxu0 }
  0xc6   :  { %v89_v7 = vadd.f32 %v88_v6, %v20_v5 }
  0xc7   :  { %v104_v8 = vpop.f32.mrf.mxu0 }
  0xc8   :  { %93 = vst.msk [vmem:[%s147_s3] sm:$0xf] %vm92_vm1, %v89_v7 }

</bundles_post_ra>
